<compile_context>
chip_gen: v6e
topology: v6e:2x2x1
jax: 0.10.0
libtpu: 0.0.40
codegen_flags: <defaults>
</compile_context>

<pallas_src>
import math

import jax
import jax.numpy as jnp
from jax.experimental import pallas as pl
from jax.experimental.pallas import tpu as pltpu


def _round_up(x, m):
    return ((x + m - 1) // m) * m


def _vmem_capacity_bytes():
    """Generation-aware VMEM capacity (64 MiB on v7x, 128 MiB on v5e/v6e)."""
    try:
        cap = getattr(pltpu.get_tpu_info(), "vmem_capacity_bytes", None)
        if cap:
            return int(cap)
    except Exception:
        pass
    return 64 * 1024 * 1024  # conservative default (v7x-sized)


def _logreg_kernel(x_ref, w_ref, b_ref, o_ref):
    # x_ref: [TB, F]; w_ref: [F, C] (pre-transposed, grid-invariant);
    # b_ref: [1, C]; o_ref: [TB, C].  Single-shot contraction over F.
    acc = jnp.dot(x_ref[...], w_ref[...], preferred_element_type=jnp.float32)
    o_ref[...] = (acc + b_ref[...]).astype(o_ref.dtype)


def _logreg_kernel_ktiled(x_ref, w_ref, b_ref, o_ref, acc_ref):
    # Feature (K) axis tiled: accumulate partial products in f32 VMEM scratch.
    k = pl.program_id(1)

    @pl.when(k == 0)
    def _():
        acc_ref[...] = jnp.zeros_like(acc_ref)

    acc_ref[...] += jnp.dot(x_ref[...], w_ref[...],
                            preferred_element_type=jnp.float32)

    @pl.when(k == pl.num_programs(1) - 1)
    def _():
        o_ref[...] = (acc_ref[...] + b_ref[...]).astype(o_ref.dtype)


def logreg_forward(seq, weight, bias, *, tile_b=1024, tile_k=512):
    """seq: [..., F]; weight: [C, F] (PyTorch layout); bias: [C] -> [..., C]."""
    *lead, F = seq.shape
    C = weight.shape[0]
    assert weight.shape == (C, F) and bias.shape == (C,)
    itemsize = jnp.dtype(jnp.float32).itemsize

    x = seq.reshape(-1, F)
    B = x.shape[0]

    # One-time transpose to [F, C]: in-kernel contraction is then plain x @ w.
    wt = weight.T.astype(jnp.float32)
    b2 = bias.reshape(1, C).astype(jnp.float32)

    cap = _vmem_capacity_bytes()
    budget = cap // 2                                  # ~32 MiB v7x, ~64 MiB v5e/v6e
    vmem_limit = min((3 * cap) // 4, 96 * 1024 * 1024)

    # Batch tile: 8-aligned, capped so the grid has >= 4 steps (megacore /
    # pipeline overlap on v7x), then shrunk to the VMEM budget below.
    tile_b = max(8, _round_up(min(tile_b, B), 8))
    tile_b = min(tile_b, max(8, _round_up(pl.cdiv(B, 4), 8)))

    # K tiling only when the (double-buffered) resident weight would crowd
    # VMEM; otherwise keep the whole [F, C] weight resident (tile_k = F).
    weight_bytes = 2 * F * C * itemsize
    if weight_bytes <= budget // 2:
        tile_k = F
    else:
        tile_k = max(128, _round_up(min(tile_k, F), 128))
        while tile_k > 128 and 2 * tile_k * C * itemsize > budget // 2:
            tile_k //= 2
    num_k = pl.cdiv(F, tile_k)

    def vmem_bytes(tb):
        n = (2 * tb * tile_k            # double-buffered x tile
             + 2 * tile_k * C           # double-buffered weight tile
             + 2 * C                    # double-buffered bias
             + 2 * tb * C)              # double-buffered output tile
        if num_k > 1:
            n += tb * C                 # f32 accumulator scratch
        return n * itemsize

    while tile_b > 8 and vmem_bytes(tile_b) > budget:
        tile_b = max(8, _round_up(tile_b // 2, 8))

    num_b = pl.cdiv(B, tile_b)

    cost = pl.CostEstimate(
        flops=2 * B * F * C,
        transcendentals=0,
        bytes_accessed=itemsize * (B * F + F * C + B * C + C))

    if num_k == 1:
        grid = (num_b,)
        in_specs = [
            pl.BlockSpec((tile_b, F), lambda i: (i, 0)),
            pl.BlockSpec((F, C), lambda i: (0, 0)),       # grid-invariant
            pl.BlockSpec((1, C), lambda i: (0, 0)),       # grid-invariant
        ]
        out_specs = pl.BlockSpec((tile_b, C), lambda i: (i, 0))
        scratch_shapes = ()
        dims = ("parallel",)
        kernel = _logreg_kernel
        x_in, w_in = x, wt
    else:
        # Zero-pad F to a multiple of tile_k: zeros are exact for the matmul
        # and keep every K block full (no unmasked garbage feeding the MXU).
        Fp = _round_up(F, tile_k)
        x_in = jnp.pad(x, ((0, 0), (0, Fp - F))) if Fp != F else x
        w_in = jnp.pad(wt, ((0, Fp - F), (0, 0))) if Fp != F else wt
        grid = (num_b, Fp // tile_k)
        in_specs = [
            pl.BlockSpec((tile_b, tile_k), lambda i, k: (i, k)),
            pl.BlockSpec((tile_k, C), lambda i, k: (k, 0)),
            pl.BlockSpec((1, C), lambda i, k: (0, 0)),
        ]
        out_specs = pl.BlockSpec((tile_b, C), lambda i, k: (i, 0))
        scratch_shapes = (pltpu.VMEM((tile_b, C), jnp.float32),)
        dims = ("parallel", "arbitrary")                  # reduction axis last
        kernel = _logreg_kernel_ktiled

    out = pl.pallas_call(
        kernel,
        out_shape=jax.ShapeDtypeStruct((B, C), seq.dtype),
        grid=grid,
        in_specs=in_specs,
        out_specs=out_specs,
        scratch_shapes=scratch_shapes,
        compiler_params=pltpu.CompilerParams(
            dimension_semantics=dims,
            vmem_limit_bytes=vmem_limit),
        cost_estimate=cost,
    )(x_in, w_in, b2)

    # TODO(synk): optional bf16 weight/output cast (halves HBM/VMEM bytes) once
    #             gated by a precision flag; kept f32 to match module numerics.
    return out.reshape(*lead, C)


def xavier_uniform(key, out_features, in_features, dtype=jnp.float32):
    # torch.nn.init.xavier_uniform_ (gain=1): U(-a, a), a = sqrt(6/(fan_in+fan_out))
    a = math.sqrt(6.0 / (in_features + out_features))
    return jax.random.uniform(key, (out_features, in_features),
                              minval=-a, maxval=a, dtype=dtype)


if __name__ == "__main__":
    ft_in, nb_classes, batch = 32, 16, 20

    key = jax.random.PRNGKey(0)
    k_w, k_x = jax.random.split(key)

    weight = xavier_uniform(k_w, nb_classes, ft_in)   # [C, F], torch layout
    bias = jnp.zeros((nb_classes,), jnp.float32)      # bias.data.fill_(0.0)
    seq = jax.random.normal(k_x, (batch, ft_in), jnp.float32)

    # Default tile selection caps tile_b to 8 here -> 3 grid steps including a
    # masked partial last block (exercises the no-pad / bounded-DMA path).
    out = jax.block_until_ready(logreg_forward(seq, weight, bias))

    ref = jnp.dot(seq, weight.T, precision=jax.lax.Precision.HIGHEST) + bias
    assert out.shape == (batch, nb_classes)
    assert jnp.allclose(out, ref, atol=1e-2, rtol=1e-2), \
        float(jnp.max(jnp.abs(out - ref)))

    print("KERNEL_OK")
</pallas_src>

<mosaic_0001>
module attributes {stable_mosaic.version = 11 : i64} {
  func.func @_logreg_kernel(%arg0: i32, %arg1: memref<8x32xf32, #tpu.memory_space<vmem>>, %arg2: memref<32x16xf32, #tpu.memory_space<vmem>>, %arg3: memref<1x16xf32, #tpu.memory_space<vmem>>, %arg4: memref<8x16xf32, #tpu.memory_space<vmem>>) attributes {dimension_semantics = [#tpu.dimension_semantics<parallel>], iteration_bounds = array<i64: 3>, scalar_prefetch = 0 : i64, scratch_operands = 0 : i64, tpu.core_type = #tpu.core_type<tc>, window_params = [{transform_indices = @transform_0, window_bounds = array<i64: 8, 32>}, {pipeline_mode = #tpu.pipeline_mode<synchronous>, transform_indices = @transform_1, window_bounds = array<i64: 32, 16>}, {pipeline_mode = #tpu.pipeline_mode<synchronous>, transform_indices = @transform_2, window_bounds = array<i64: 1, 16>}, {transform_indices = @transform_3, window_bounds = array<i64: 8, 16>}]} {
    %c0 = arith.constant 0 : index
    %c0_0 = arith.constant 0 : index
    %0 = vector.load %arg1[%c0, %c0_0] : memref<8x32xf32, #tpu.memory_space<vmem>>, vector<8x32xf32>
    %c0_1 = arith.constant 0 : index
    %c0_2 = arith.constant 0 : index
    %1 = vector.load %arg2[%c0_1, %c0_2] : memref<32x16xf32, #tpu.memory_space<vmem>>, vector<32x16xf32>
    %cst = arith.constant dense<0.000000e+00> : vector<8x16xf32>
    %2 = tpu.matmul %0, %1, %cst {dimension_numbers = #tpu.dot_dimension_numbers<[1], [0], [0], [1], [0, 0, 1, 1], [], []>} : vector<8x32xf32>, vector<32x16xf32>, vector<8x16xf32> -> vector<8x16xf32>
    %c0_3 = arith.constant 0 : index
    %c0_4 = arith.constant 0 : index
    %3 = vector.load %arg3[%c0_3, %c0_4] : memref<1x16xf32, #tpu.memory_space<vmem>>, vector<1x16xf32>
    %4 = vector.broadcast %3 : vector<1x16xf32> to vector<8x16xf32>
    %5 = arith.addf %2, %4 : vector<8x16xf32>
    %c0_5 = arith.constant 0 : index
    %c0_6 = arith.constant 0 : index
    %6 = vector.load %arg4[%c0_5, %c0_6] : memref<8x16xf32, #tpu.memory_space<vmem>>, vector<8x16xf32>
    tpu.vector_store %arg4[%c0_5, %c0_6], %5 {strides = array<i32>} : memref<8x16xf32, #tpu.memory_space<vmem>>, vector<8x16xf32>,
    return
  }
  func.func @transform_0(%arg0: i32) -> (i32, i32) {
    %c0_i32 = arith.constant 0 : i32
    %c0_i32_0 = arith.constant 0 : i32
    return %arg0, %c0_i32 : i32, i32
  }
  func.func @transform_1(%arg0: i32) -> (i32, i32) {
    %c0_i32 = arith.constant 0 : i32
    %c0_i32_0 = arith.constant 0 : i32
    %c0_i32_1 = arith.constant 0 : i32
    return %c0_i32, %c0_i32_0 : i32, i32
  }
  func.func @transform_2(%arg0: i32) -> (i32, i32) {
    %c0_i32 = arith.constant 0 : i32
    %c0_i32_0 = arith.constant 0 : i32
    %c0_i32_1 = arith.constant 0 : i32
    return %c0_i32, %c0_i32_0 : i32, i32
  }
  func.func @transform_3(%arg0: i32) -> (i32, i32) {
    %c0_i32 = arith.constant 0 : i32
    %c0_i32_0 = arith.constant 0 : i32
    return %arg0, %c0_i32 : i32, i32
  }
}

</mosaic_0001>

<bundles_post_ra>
// kernel: tpu_custom_call.1
= control target key start
LH: loop header
LB: loop body
LE: loop exit
PB: predicated region body
PF: predicated region fallthrough
CT: control target
= control target key end

     0   :  { %s374_s12 = smov 0   ;;  %s406_s0 = inlined_call_operand.vmem [shape: f32[20,32], index: 0, kind: input, shape index: {}]   ;;  %s407_s1 = inlined_call_operand.vmem [shape: f32[32,16], index: 1, kind: input, shape index: {}]   ;;  %s408_s2 = inlined_call_operand.vmem [shape: f32[1,16], index: 2, kind: input, shape index: {}]   ;;  %s409_s3 = inlined_call_operand.vmem [shape: f32[20,16], index: 3, kind: output, shape index: {}]  }
   0x1 LB: > { %s307_s13 = sadd.s32 4294967295, %s350_s12   ;;  %p311_p0 = scmp.ge.s32.totalorder %s350_s12, 1  ;;  %s350_s12 = sphi %s374_s12, %s13_s12  }
   0x2   : > { %p136_p1 = scmp.lt.s32.totalorder %s350_s12, 4 }
   0x4   : > { %p137_p2 = pnand %p311_p0, %p136_p1 }
   0x5   : > { %p158_p3 = scmp.lt.s32.totalorder (!%p137_p2), %s307_s13, 2 }
   0x6   : > { %140 = sbr.rel (%p137_p2) target bundleno = 216 (0xd8), region = 32 }
   0xb   : > { %v170_v0 = vld [vmem:[%s407_s1 + $0x18] sm:$0xff]  ;;  %v352_v1 = vmov 0.0   ;;  %v169_v2 = vld [vmem:[%s407_s1 + $0x10] sm:$0xff]  ;;  %vm353_vm0 = vmmov 0   ;;  %s411_s13 = smov (!%p158_p3, %s307_s13), 2  ;;  %v168_v3 = vld [vmem:[%s407_s1 + $0x8] sm:$0xff] }
   0xc   : > { %323 = vmatprep.subr.mxu0 %v352_v1  ;;  %331 = vmatprep.mubr.msk.f32.mxu0 %vm353_vm0, %v352_v1  ;;  %s312_s20 = sshll.u32 %s411_s13, 3  ;;  %v167_v4 = vld [vmem:[%s407_s1] sm:$0xff]  ;;  %vm178_vm1 = vcmask 261120   ;;  %vm252_vm2 = vcmask 130048  }
   0xd   : > { %324 = vmatpush3.msra.mxu0 %v170_v0  ;;  %s161_s25 = scalar_lea.vmem %s406_s0, %s312_s20  ;;  %v314_v6 = vld [vmem:[%s408_s2] ss:$0 sm:$0xff]  ;;  %s165_s30 = scalar_lea.vmem %s409_s3, %s312_s20 }
   0xe   : > { %325 = vmatprep.subr.mxu0 %v352_v1  ;;  %v166_v5 = vld [vmem:[%s161_s25] sm:$0xff] }
   0xf   : > { %326 = vmatpush3.msra.mxu0 %v169_v2 }
  0x10   : > { %327 = vmatprep.subr.mxu0 %v352_v1 }
  0x11   : > { %328 = vmatpush3.msra.mxu0 %v168_v3 }
  0x12   : > { %329 = vmatprep.subr.mxu0 %v352_v1 }
  0x13   : > { %330 = vmatpush3.msra.mxu0 %v167_v4 }
  0x14   : > { %332 = vmatmul.mubr.msk.f32.vlgmr.msra.gmra.mxu0 %vm178_vm1, %v166_v5 }
  0xd4   : > { %v248_v7 = vpop.f32.mrf.mxu0 }
  0xd5   : > { %v249_v8 = vadd.f32 %v314_v6, %v248_v7 }
  0xd6   : > { %v333_v9 = vpop.f32.mrf.mxu0 }
  0xd7   : > { %253 = vst.msk [vmem:[%s165_s30] sm:$0xff] %vm252_vm2, %v249_v8 }
  0xd8 PF: > { %s13_s12 = sadd.s32 1, %s350_s12  }
  0xd9   : > { %p10_p4 = scmp.ge.s32.totalorder %s13_s12, 5  }
  0xdb   :  { %12 = sbr.rel (!%p10_p4) target bundleno = 1 (0x1), region = 62 }

</bundles_post_ra>
